<compile_context>
chip_gen: v7x
topology: tpu7x:2x2x1
jax: 0.10.0
libtpu: 0.0.40
codegen_flags: <defaults>
</compile_context>

<pallas_src>
import math
import functools

import jax
import jax.numpy as jnp
from jax import lax
from jax.experimental import pallas as pl
from jax.experimental.pallas import tpu as pltpu


def _mha_kernel(q_ref, k_ref, v_ref, mask_ref, wq_ref, wk_ref, wv_ref,
                ctx_ref, attn_ref, *, scale, heads_per_block, d_k, d_v,
                in_dtype, exp_dtype):
    """One grid step == one (batch, q-tile, head-block)."""
    hb = pl.program_id(2)

    q = q_ref[...]                       # (tile_q, d_model)  native dtype
    k = k_ref[...]                       # (L_k,    d_model)
    v = v_ref[...]                       # (L_k,    d_model)

    # Resident all-head weights; pick this step's head block (dynamic lead index).
    wq = wq_ref[hb]                      # (d_model, hpb*d_k)
    wk = wk_ref[hb]                      # (d_model, hpb*d_k)
    wv = wv_ref[hb]                      # (d_model, hpb*d_v)

    # Fused head-block projections (MXU N = hpb*d_k / hpb*d_v), f32 accumulation,
    # 1/sqrt(d_k) folded into q once.  Downstream MXU ops consume the model dtype.
    qp = (jnp.dot(q, wq, preferred_element_type=jnp.float32)
          * jnp.float32(scale)).astype(in_dtype)                      # (tq, hpb*d_k)
    kp = jnp.dot(k, wk, preferred_element_type=jnp.float32).astype(in_dtype)
    vp = jnp.dot(v, wv, preferred_element_type=jnp.float32).astype(in_dtype)

    mask = mask_ref[...].astype(jnp.float32)                          # (tq, L_k)

    for i in range(heads_per_block):
        qh = qp[:, i * d_k:(i + 1) * d_k]                             # (tq, d_k)
        kh = kp[:, i * d_k:(i + 1) * d_k]                             # (Lk, d_k)
        vh = vp[:, i * d_v:(i + 1) * d_v]                             # (Lk, d_v)

        # scores = qh @ kh^T with the transpose folded into the MXU operand feed.
        s = lax.dot_general(qh, kh, (((1,), (1,)), ((), ())),
                            preferred_element_type=jnp.float32)       # (tq, Lk)
        s = s + mask

        # Numerically-stable softmax; exp in bf16 on bf16 models (v6e/v7x EUP),
        # f32 sum accumulation, exact reciprocal so stored rows sum to 1.
        m = s.max(axis=-1, keepdims=True)
        e = jnp.exp((s - m).astype(exp_dtype))
        denom = jnp.sum(e.astype(jnp.float32), axis=-1, keepdims=True)
        p = e.astype(jnp.float32) * pl.reciprocal(denom, approx=False)

        attn_ref[i] = p.astype(attn_ref.dtype)
        # (attention-probs dropout: identity in eval mode)
        ctx = jnp.dot(p.astype(in_dtype), vh,
                      preferred_element_type=jnp.float32)             # (tq, d_v)
        ctx_ref[i] = ctx.astype(ctx_ref.dtype)


def _pick_tile_q(L_q, target):
    """Largest multiple-of-8 divisor of L_q <= target (or L_q itself)."""
    if L_q <= target:
        return L_q
    t = (target // 8) * 8
    while t >= 8:
        if L_q % t == 0:
            return t
        t -= 8
    return L_q


def _pick_heads_per_block(n_heads, d_k, max_block_cols=512):
    """Smallest divisor of n_heads whose fused projection width reaches ~256."""
    best = 1
    for h in range(1, n_heads + 1):
        if n_heads % h != 0:
            continue
        if h * d_k > max_block_cols and best > 1:
            break
        best = h
        if h * d_k >= 256:
            break
    return best


def multi_head_attention(q, k, v, w_q, w_k, w_v, attn_mask=None, *,
                         q_tile_target=256, heads_per_block=None,
                         split_outputs=True):
    """Pallas forward of _MultiHeadAttention.

    Returns (outputs, attn) like the PyTorch module:
      outputs : tuple of n_heads arrays (B, L_q, d_v)   [== torch.split(outputs, B, 0)]
                (or a single (n_heads, B, L_q, d_v) array if split_outputs=False)
      attn    : (n_heads * B, L_q, L_k)  head-major, batch-minor ordering

    q_tile_target: ~256 is safe on v7x (64 MiB VMEM); v5e/v6e can use ~512.
    """
    n_heads, d_model, d_k = w_q.shape
    d_v = w_v.shape[-1]
    B, L_q, _ = q.shape
    L_k = k.shape[1]

    if attn_mask is None:
        attn_mask = jnp.zeros((B, L_q, L_k), q.dtype)

    tile_q = _pick_tile_q(L_q, q_tile_target)
    hpb = heads_per_block or _pick_heads_per_block(n_heads, d_k)
    assert n_heads % hpb == 0 and L_q % tile_q == 0
    n_hb = n_heads // hpb
    n_qt = L_q // tile_q

    # Pack per-head weights into per-head-block slabs (n_hb, d_model, hpb*d):
    # columns [i*d:(i+1)*d] of block hb correspond to global head hb*hpb + i.
    def _block_heads(w):
        H, dm, d = w.shape
        return (w.reshape(n_hb, hpb, dm, d)
                 .transpose(0, 2, 1, 3)
                 .reshape(n_hb, dm, hpb * d))
    wq_b, wk_b, wv_b = _block_heads(w_q), _block_heads(w_k), _block_heads(w_v)

    exp_dtype = jnp.bfloat16 if q.dtype == jnp.bfloat16 else jnp.float32
    kernel = functools.partial(
        _mha_kernel, scale=1.0 / math.sqrt(d_k), heads_per_block=hpb,
        d_k=d_k, d_v=d_v, in_dtype=q.dtype, exp_dtype=exp_dtype)

    # Explicit VMEM budget (defaults are only 16/32 MiB scoped).
    isz = q.dtype.itemsize
    wsz = w_q.dtype.itemsize
    msz = attn_mask.dtype.itemsize
    est = (2 * tile_q * d_model * isz                       # q block (double buffered)
           + 2 * 2 * L_k * d_model * isz                    # k + v blocks
           + 2 * tile_q * L_k * msz                         # mask block
           + 2 * n_heads * d_model * (2 * d_k + d_v) * wsz  # resident weights
           + 2 * hpb * tile_q * L_k * isz                   # attn out block
           + 2 * hpb * tile_q * d_v * isz                   # ctx out block
           + 4 * hpb * (tile_q * d_k + L_k * d_k + L_k * d_v)  # f32 projections
           + 4 * 4 * tile_q * L_k)                          # live f32 softmax temps
    vmem_limit = int(min(max(2 * est, 32 * 2**20), 96 * 2**20))

    grid = (B, n_qt, n_hb)   # batch / q-tiles outer, head blocks innermost (reuse)

    ctx, attn = pl.pallas_call(
        kernel,
        out_shape=(jax.ShapeDtypeStruct((n_heads, B, L_q, d_v), q.dtype),
                   jax.ShapeDtypeStruct((n_heads, B, L_q, L_k), q.dtype)),
        grid_spec=pltpu.PrefetchScalarGridSpec(
            num_scalar_prefetch=0,
            grid=grid,
            in_specs=[
                # q / mask: index independent of head axis -> reused across heads
                pl.BlockSpec((pl.Squeezed(), tile_q, d_model),
                             lambda b, qt, hb: (b, qt, 0)),
                # k / v: reused across q-tiles AND head blocks (fetched once per b)
                pl.BlockSpec((pl.Squeezed(), L_k, d_model),
                             lambda b, qt, hb: (b, 0, 0)),
                pl.BlockSpec((pl.Squeezed(), L_k, d_model),
                             lambda b, qt, hb: (b, 0, 0)),
                pl.BlockSpec((pl.Squeezed(), tile_q, L_k),
                             lambda b, qt, hb: (b, qt, 0)),
                # all-head weights: grid-constant index -> DMA'd once, VMEM-resident
                pl.BlockSpec((n_hb, d_model, hpb * d_k), lambda b, qt, hb: (0, 0, 0)),
                pl.BlockSpec((n_hb, d_model, hpb * d_k), lambda b, qt, hb: (0, 0, 0)),
                pl.BlockSpec((n_hb, d_model, hpb * d_v), lambda b, qt, hb: (0, 0, 0)),
            ],
            out_specs=(
                pl.BlockSpec((hpb, pl.Squeezed(), tile_q, d_v),
                             lambda b, qt, hb: (hb, b, qt, 0)),
                pl.BlockSpec((hpb, pl.Squeezed(), tile_q, L_k),
                             lambda b, qt, hb: (hb, b, qt, 0)),
            ),
        ),
        compiler_params=pltpu.CompilerParams(
            dimension_semantics=("parallel", "parallel", "arbitrary"),
            vmem_limit_bytes=vmem_limit),
    )(q, k, v, attn_mask, wq_b, wk_b, wv_b)

    attn = attn.reshape(n_heads * B, L_q, L_k)
    if not split_outputs:
        return ctx, attn
    # Tuple only for torch.split parity; ctx itself is one contiguous array.
    outputs = tuple(ctx[h] for h in range(n_heads))
    return outputs, attn


def _reference(q, k, v, w_q, w_k, w_v, attn_mask):
    """Pure-JAX reference mirroring the PyTorch forward (eval mode)."""
    d_k = w_q.shape[-1]
    qs = jnp.einsum("bld,hdk->hblk", q, w_q)
    ks = jnp.einsum("bld,hdk->hblk", k, w_k)
    vs = jnp.einsum("bld,hdv->hblv", v, w_v)
    scores = jnp.einsum("hbqd,hbkd->hbqk", qs, ks) / math.sqrt(d_k)
    scores = scores + attn_mask[None]            # == attn_mask.repeat(n_heads,1,1)
    probs = jax.nn.softmax(scores, axis=-1)
    ctx = jnp.einsum("hbqk,hbkv->hbqv", probs, vs)
    return ctx, probs                            # (H,B,Lq,dv), (H,B,Lq,Lk)


if __name__ == "__main__":
    B, L, D_MODEL, N_HEADS, D_K, D_V = 2, 8, 32, 4, 8, 8

    key = jax.random.PRNGKey(0)
    ks = jax.random.split(key, 6)
    wscale = 1.0 / math.sqrt(D_MODEL)

    q = jax.random.normal(ks[0], (B, L, D_MODEL), jnp.float32)
    k = jax.random.normal(ks[1], (B, L, D_MODEL), jnp.float32)
    v = jax.random.normal(ks[2], (B, L, D_MODEL), jnp.float32)
    w_q = jax.random.normal(ks[3], (N_HEADS, D_MODEL, D_K), jnp.float32) * wscale
    w_k = jax.random.normal(ks[4], (N_HEADS, D_MODEL, D_K), jnp.float32) * wscale
    w_v = jax.random.normal(ks[5], (N_HEADS, D_MODEL, D_V), jnp.float32) * wscale

    # Additive mask (as the module expects): mask out the last two key positions
    # of batch element 1.
    attn_mask = jnp.zeros((B, L, L), jnp.float32).at[1, :, L - 2:].set(-1e9)

    outputs, attn = multi_head_attention(q, k, v, w_q, w_k, w_v, attn_mask)
    outputs = jax.block_until_ready(outputs)
    attn = jax.block_until_ready(attn)

    ref_ctx, ref_probs = _reference(q, k, v, w_q, w_k, w_v, attn_mask)

    assert len(outputs) == N_HEADS
    for h in range(N_HEADS):
        assert outputs[h].shape == (B, L, D_V)
        assert jnp.allclose(outputs[h], ref_ctx[h], atol=2e-3, rtol=2e-3), \
            f"context mismatch on head {h}"
    assert attn.shape == (N_HEADS * B, L, L)
    assert jnp.allclose(attn, ref_probs.reshape(N_HEADS * B, L, L),
                        atol=2e-3, rtol=2e-3), "attention-probs mismatch"

    print("KERNEL_OK")
</pallas_src>

<mosaic_0001>
module attributes {stable_mosaic.version = 11 : i64} {
  func.func @_mha_kernel(%arg0: i32, %arg1: i32, %arg2: i32, %arg3: memref<1x8x32xf32, #tpu.memory_space<vmem>>, %arg4: memref<1x8x32xf32, #tpu.memory_space<vmem>>, %arg5: memref<1x8x32xf32, #tpu.memory_space<vmem>>, %arg6: memref<1x8x8xf32, #tpu.memory_space<vmem>>, %arg7: memref<1x32x32xf32, #tpu.memory_space<vmem>>, %arg8: memref<1x32x32xf32, #tpu.memory_space<vmem>>, %arg9: memref<1x32x32xf32, #tpu.memory_space<vmem>>, %arg10: memref<4x1x8x8xf32, #tpu.memory_space<vmem>>, %arg11: memref<4x1x8x8xf32, #tpu.memory_space<vmem>>) attributes {dimension_semantics = [#tpu.dimension_semantics<parallel>, #tpu.dimension_semantics<parallel>, #tpu.dimension_semantics<arbitrary>], iteration_bounds = array<i64: 2, 1, 1>, scalar_prefetch = 0 : i64, scratch_operands = 0 : i64, tpu.core_type = #tpu.core_type<tc>, window_params = [{transform_indices = @transform_0, window_bounds = array<i64: 1, 8, 32>}, {transform_indices = @transform_1, window_bounds = array<i64: 1, 8, 32>}, {transform_indices = @transform_2, window_bounds = array<i64: 1, 8, 32>}, {transform_indices = @transform_3, window_bounds = array<i64: 1, 8, 8>}, {pipeline_mode = #tpu.pipeline_mode<synchronous>, transform_indices = @transform_4, window_bounds = array<i64: 1, 32, 32>}, {pipeline_mode = #tpu.pipeline_mode<synchronous>, transform_indices = @transform_5, window_bounds = array<i64: 1, 32, 32>}, {pipeline_mode = #tpu.pipeline_mode<synchronous>, transform_indices = @transform_6, window_bounds = array<i64: 1, 32, 32>}, {transform_indices = @transform_7, window_bounds = array<i64: 4, 1, 8, 8>}, {transform_indices = @transform_8, window_bounds = array<i64: 4, 1, 8, 8>}]} {
    %c0 = arith.constant 0 : index
    %c0_0 = arith.constant 0 : index
    %c0_1 = arith.constant 0 : index
    %0 = vector.load %arg3[%c0, %c0_0, %c0_1] : memref<1x8x32xf32, #tpu.memory_space<vmem>>, vector<1x8x32xf32>
    %1 = vector.shape_cast %0 : vector<1x8x32xf32> to vector<8x32xf32>
    %c0_2 = arith.constant 0 : index
    %c0_3 = arith.constant 0 : index
    %c0_4 = arith.constant 0 : index
    %2 = vector.load %arg4[%c0_2, %c0_3, %c0_4] : memref<1x8x32xf32, #tpu.memory_space<vmem>>, vector<1x8x32xf32>
    %3 = vector.shape_cast %2 : vector<1x8x32xf32> to vector<8x32xf32>
    %c0_5 = arith.constant 0 : index
    %c0_6 = arith.constant 0 : index
    %c0_7 = arith.constant 0 : index
    %4 = vector.load %arg5[%c0_5, %c0_6, %c0_7] : memref<1x8x32xf32, #tpu.memory_space<vmem>>, vector<1x8x32xf32>
    %5 = vector.shape_cast %4 : vector<1x8x32xf32> to vector<8x32xf32>
    %6 = arith.index_cast %arg2 : i32 to index
    %c0_8 = arith.constant 0 : index
    %c0_9 = arith.constant 0 : index
    %7 = vector.load %arg7[%6, %c0_8, %c0_9] : memref<1x32x32xf32, #tpu.memory_space<vmem>>, vector<1x32x32xf32>
    %8 = vector.shape_cast %7 : vector<1x32x32xf32> to vector<32x32xf32>
    %9 = arith.index_cast %arg2 : i32 to index
    %c0_10 = arith.constant 0 : index
    %c0_11 = arith.constant 0 : index
    %10 = vector.load %arg8[%9, %c0_10, %c0_11] : memref<1x32x32xf32, #tpu.memory_space<vmem>>, vector<1x32x32xf32>
    %11 = vector.shape_cast %10 : vector<1x32x32xf32> to vector<32x32xf32>
    %12 = arith.index_cast %arg2 : i32 to index
    %c0_12 = arith.constant 0 : index
    %c0_13 = arith.constant 0 : index
    %13 = vector.load %arg9[%12, %c0_12, %c0_13] : memref<1x32x32xf32, #tpu.memory_space<vmem>>, vector<1x32x32xf32>
    %14 = vector.shape_cast %13 : vector<1x32x32xf32> to vector<32x32xf32>
    %cst = arith.constant dense<0.000000e+00> : vector<8x32xf32>
    %15 = tpu.matmul %1, %8, %cst {dimension_numbers = #tpu.dot_dimension_numbers<[1], [0], [0], [1], [0, 0, 1, 1], [], []>} : vector<8x32xf32>, vector<32x32xf32>, vector<8x32xf32> -> vector<8x32xf32>
    %cst_14 = arith.constant 0.353553385 : f32
    %16 = vector.broadcast %cst_14 : f32 to vector<8x32xf32>
    %17 = arith.mulf %15, %16 : vector<8x32xf32>
    %cst_15 = arith.constant dense<0.000000e+00> : vector<8x32xf32>
    %18 = tpu.matmul %3, %11, %cst_15 {dimension_numbers = #tpu.dot_dimension_numbers<[1], [0], [0], [1], [0, 0, 1, 1], [], []>} : vector<8x32xf32>, vector<32x32xf32>, vector<8x32xf32> -> vector<8x32xf32>
    %cst_16 = arith.constant dense<0.000000e+00> : vector<8x32xf32>
    %19 = tpu.matmul %5, %14, %cst_16 {dimension_numbers = #tpu.dot_dimension_numbers<[1], [0], [0], [1], [0, 0, 1, 1], [], []>} : vector<8x32xf32>, vector<32x32xf32>, vector<8x32xf32> -> vector<8x32xf32>
    %c0_17 = arith.constant 0 : index
    %c0_18 = arith.constant 0 : index
    %c0_19 = arith.constant 0 : index
    %20 = vector.load %arg6[%c0_17, %c0_18, %c0_19] : memref<1x8x8xf32, #tpu.memory_space<vmem>>, vector<1x8x8xf32>
    %21 = vector.shape_cast %20 : vector<1x8x8xf32> to vector<8x8xf32>
    %22 = vector.extract_strided_slice %17 {offsets = [0, 0], sizes = [8, 8], strides = [1, 1]} : vector<8x32xf32> to vector<8x8xf32>
    %23 = vector.extract_strided_slice %18 {offsets = [0, 0], sizes = [8, 8], strides = [1, 1]} : vector<8x32xf32> to vector<8x8xf32>
    %24 = vector.extract_strided_slice %19 {offsets = [0, 0], sizes = [8, 8], strides = [1, 1]} : vector<8x32xf32> to vector<8x8xf32>
    %cst_20 = arith.constant dense<0.000000e+00> : vector<8x8xf32>
    %25 = tpu.matmul %22, %23, %cst_20 {dimension_numbers = #tpu.dot_dimension_numbers<[1], [1], [0], [0], [0, 0, 1, 0], [], []>} : vector<8x8xf32>, vector<8x8xf32>, vector<8x8xf32> -> vector<8x8xf32>
    %26 = arith.addf %25, %21 : vector<8x8xf32>
    %cst_21 = arith.constant dense<0xFF800000> : vector<8xf32>
    %27 = vector.multi_reduction <maximumf>, %26, %cst_21 [1] : vector<8x8xf32> to vector<8xf32>
    %28 = vector.shape_cast %27 : vector<8xf32> to vector<8x1xf32>
    %29 = vector.broadcast %28 : vector<8x1xf32> to vector<8x8xf32>
    %30 = arith.subf %26, %29 : vector<8x8xf32>
    %31 = math.exp %30 : vector<8x8xf32>
    %cst_22 = arith.constant dense<0.000000e+00> : vector<8xf32>
    %32 = vector.multi_reduction <add>, %31, %cst_22 [1] : vector<8x8xf32> to vector<8xf32>
    %33 = vector.shape_cast %32 : vector<8xf32> to vector<8x1xf32>
    %34 = tpu.reciprocal %33 : vector<8x1xf32> -> vector<8x1xf32>
    %35 = vector.broadcast %34 : vector<8x1xf32> to vector<8x8xf32>
    %36 = arith.mulf %31, %35 : vector<8x8xf32>
    %c0_23 = arith.constant 0 : index
    %c0_24 = arith.constant 0 : index
    %c0_25 = arith.constant 0 : index
    %c0_26 = arith.constant 0 : index
    %37 = vector.load %arg11[%c0_23, %c0_24, %c0_25, %c0_26] : memref<4x1x8x8xf32, #tpu.memory_space<vmem>>, vector<1x1x8x8xf32>
    %38 = vector.shape_cast %37 : vector<1x1x8x8xf32> to vector<8x8xf32>
    %39 = vector.shape_cast %36 : vector<8x8xf32> to vector<1x1x8x8xf32>
    tpu.vector_store %arg11[%c0_23, %c0_24, %c0_25, %c0_26], %39 {strides = array<i32>} : memref<4x1x8x8xf32, #tpu.memory_space<vmem>>, vector<1x1x8x8xf32>,
    %cst_27 = arith.constant dense<0.000000e+00> : vector<8x8xf32>
    %40 = tpu.matmul %36, %24, %cst_27 {dimension_numbers = #tpu.dot_dimension_numbers<[1], [0], [0], [1], [0, 0, 1, 1], [], []>} : vector<8x8xf32>, vector<8x8xf32>, vector<8x8xf32> -> vector<8x8xf32>
    %c0_28 = arith.constant 0 : index
    %c0_29 = arith.constant 0 : index
    %c0_30 = arith.constant 0 : index
    %c0_31 = arith.constant 0 : index
    %41 = vector.load %arg10[%c0_28, %c0_29, %c0_30, %c0_31] : memref<4x1x8x8xf32, #tpu.memory_space<vmem>>, vector<1x1x8x8xf32>
    %42 = vector.shape_cast %41 : vector<1x1x8x8xf32> to vector<8x8xf32>
    %43 = vector.shape_cast %40 : vector<8x8xf32> to vector<1x1x8x8xf32>
    tpu.vector_store %arg10[%c0_28, %c0_29, %c0_30, %c0_31], %43 {strides = array<i32>} : memref<4x1x8x8xf32, #tpu.memory_space<vmem>>, vector<1x1x8x8xf32>,
    %44 = vector.extract_strided_slice %17 {offsets = [0, 8], sizes = [8, 8], strides = [1, 1]} : vector<8x32xf32> to vector<8x8xf32>
    %45 = vector.extract_strided_slice %18 {offsets = [0, 8], sizes = [8, 8], strides = [1, 1]} : vector<8x32xf32> to vector<8x8xf32>
    %46 = vector.extract_strided_slice %19 {offsets = [0, 8], sizes = [8, 8], strides = [1, 1]} : vector<8x32xf32> to vector<8x8xf32>
    %cst_32 = arith.constant dense<0.000000e+00> : vector<8x8xf32>
    %47 = tpu.matmul %44, %45, %cst_32 {dimension_numbers = #tpu.dot_dimension_numbers<[1], [1], [0], [0], [0, 0, 1, 0], [], []>} : vector<8x8xf32>, vector<8x8xf32>, vector<8x8xf32> -> vector<8x8xf32>
    %48 = arith.addf %47, %21 : vector<8x8xf32>
    %cst_33 = arith.constant dense<0xFF800000> : vector<8xf32>
    %49 = vector.multi_reduction <maximumf>, %48, %cst_33 [1] : vector<8x8xf32> to vector<8xf32>
    %50 = vector.shape_cast %49 : vector<8xf32> to vector<8x1xf32>
    %51 = vector.broadcast %50 : vector<8x1xf32> to vector<8x8xf32>
    %52 = arith.subf %48, %51 : vector<8x8xf32>
    %53 = math.exp %52 : vector<8x8xf32>
    %cst_34 = arith.constant dense<0.000000e+00> : vector<8xf32>
    %54 = vector.multi_reduction <add>, %53, %cst_34 [1] : vector<8x8xf32> to vector<8xf32>
    %55 = vector.shape_cast %54 : vector<8xf32> to vector<8x1xf32>
    %56 = tpu.reciprocal %55 : vector<8x1xf32> -> vector<8x1xf32>
    %57 = vector.broadcast %56 : vector<8x1xf32> to vector<8x8xf32>
    %58 = arith.mulf %53, %57 : vector<8x8xf32>
    %c1 = arith.constant 1 : index
    %c0_35 = arith.constant 0 : index
    %c0_36 = arith.constant 0 : index
    %c0_37 = arith.constant 0 : index
    %59 = vector.load %arg11[%c1, %c0_35, %c0_36, %c0_37] : memref<4x1x8x8xf32, #tpu.memory_space<vmem>>, vector<1x1x8x8xf32>
    %60 = vector.shape_cast %59 : vector<1x1x8x8xf32> to vector<8x8xf32>
    %61 = vector.shape_cast %58 : vector<8x8xf32> to vector<1x1x8x8xf32>
    tpu.vector_store %arg11[%c1, %c0_35, %c0_36, %c0_37], %61 {strides = array<i32>} : memref<4x1x8x8xf32, #tpu.memory_space<vmem>>, vector<1x1x8x8xf32>,
    %cst_38 = arith.constant dense<0.000000e+00> : vector<8x8xf32>
    %62 = tpu.matmul %58, %46, %cst_38 {dimension_numbers = #tpu.dot_dimension_numbers<[1], [0], [0], [1], [0, 0, 1, 1], [], []>} : vector<8x8xf32>, vector<8x8xf32>, vector<8x8xf32> -> vector<8x8xf32>
    %c1_39 = arith.constant 1 : index
    %c0_40 = arith.constant 0 : index
    %c0_41 = arith.constant 0 : index
    %c0_42 = arith.constant 0 : index
    %63 = vector.load %arg10[%c1_39, %c0_40, %c0_41, %c0_42] : memref<4x1x8x8xf32, #tpu.memory_space<vmem>>, vector<1x1x8x8xf32>
    %64 = vector.shape_cast %63 : vector<1x1x8x8xf32> to vector<8x8xf32>
    %65 = vector.shape_cast %62 : vector<8x8xf32> to vector<1x1x8x8xf32>
    tpu.vector_store %arg10[%c1_39, %c0_40, %c0_41, %c0_42], %65 {strides = array<i32>} : memref<4x1x8x8xf32, #tpu.memory_space<vmem>>, vector<1x1x8x8xf32>,
    %66 = vector.extract_strided_slice %17 {offsets = [0, 16], sizes = [8, 8], strides = [1, 1]} : vector<8x32xf32> to vector<8x8xf32>
    %67 = vector.extract_strided_slice %18 {offsets = [0, 16], sizes = [8, 8], strides = [1, 1]} : vector<8x32xf32> to vector<8x8xf32>
    %68 = vector.extract_strided_slice %19 {offsets = [0, 16], sizes = [8, 8], strides = [1, 1]} : vector<8x32xf32> to vector<8x8xf32>
    %cst_43 = arith.constant dense<0.000000e+00> : vector<8x8xf32>
    %69 = tpu.matmul %66, %67, %cst_43 {dimension_numbers = #tpu.dot_dimension_numbers<[1], [1], [0], [0], [0, 0, 1, 0], [], []>} : vector<8x8xf32>, vector<8x8xf32>, vector<8x8xf32> -> vector<8x8xf32>
    %70 = arith.addf %69, %21 : vector<8x8xf32>
    %cst_44 = arith.constant dense<0xFF800000> : vector<8xf32>
    %71 = vector.multi_reduction <maximumf>, %70, %cst_44 [1] : vector<8x8xf32> to vector<8xf32>
    %72 = vector.shape_cast %71 : vector<8xf32> to vector<8x1xf32>
    %73 = vector.broadcast %72 : vector<8x1xf32> to vector<8x8xf32>
    %74 = arith.subf %70, %73 : vector<8x8xf32>
    %75 = math.exp %74 : vector<8x8xf32>
    %cst_45 = arith.constant dense<0.000000e+00> : vector<8xf32>
    %76 = vector.multi_reduction <add>, %75, %cst_45 [1] : vector<8x8xf32> to vector<8xf32>
    %77 = vector.shape_cast %76 : vector<8xf32> to vector<8x1xf32>
    %78 = tpu.reciprocal %77 : vector<8x1xf32> -> vector<8x1xf32>
    %79 = vector.broadcast %78 : vector<8x1xf32> to vector<8x8xf32>
    %80 = arith.mulf %75, %79 : vector<8x8xf32>
    %c2 = arith.constant 2 : index
    %c0_46 = arith.constant 0 : index
    %c0_47 = arith.constant 0 : index
    %c0_48 = arith.constant 0 : index
    %81 = vector.load %arg11[%c2, %c0_46, %c0_47, %c0_48] : memref<4x1x8x8xf32, #tpu.memory_space<vmem>>, vector<1x1x8x8xf32>
    %82 = vector.shape_cast %81 : vector<1x1x8x8xf32> to vector<8x8xf32>
    %83 = vector.shape_cast %80 : vector<8x8xf32> to vector<1x1x8x8xf32>
    tpu.vector_store %arg11[%c2, %c0_46, %c0_47, %c0_48], %83 {strides = array<i32>} : memref<4x1x8x8xf32, #tpu.memory_space<vmem>>, vector<1x1x8x8xf32>,
    %cst_49 = arith.constant dense<0.000000e+00> : vector<8x8xf32>
    %84 = tpu.matmul %80, %68, %cst_49 {dimension_numbers = #tpu.dot_dimension_numbers<[1], [0], [0], [1], [0, 0, 1, 1], [], []>} : vector<8x8xf32>, vector<8x8xf32>, vector<8x8xf32> -> vector<8x8xf32>
    %c2_50 = arith.constant 2 : index
    %c0_51 = arith.constant 0 : index
    %c0_52 = arith.constant 0 : index
    %c0_53 = arith.constant 0 : index
    %85 = vector.load %arg10[%c2_50, %c0_51, %c0_52, %c0_53] : memref<4x1x8x8xf32, #tpu.memory_space<vmem>>, vector<1x1x8x8xf32>
    %86 = vector.shape_cast %85 : vector<1x1x8x8xf32> to vector<8x8xf32>
    %87 = vector.shape_cast %84 : vector<8x8xf32> to vector<1x1x8x8xf32>
    tpu.vector_store %arg10[%c2_50, %c0_51, %c0_52, %c0_53], %87 {strides = array<i32>} : memref<4x1x8x8xf32, #tpu.memory_space<vmem>>, vector<1x1x8x8xf32>,
    %88 = vector.extract_strided_slice %17 {offsets = [0, 24], sizes = [8, 8], strides = [1, 1]} : vector<8x32xf32> to vector<8x8xf32>
    %89 = vector.extract_strided_slice %18 {offsets = [0, 24], sizes = [8, 8], strides = [1, 1]} : vector<8x32xf32> to vector<8x8xf32>
    %90 = vector.extract_strided_slice %19 {offsets = [0, 24], sizes = [8, 8], strides = [1, 1]} : vector<8x32xf32> to vector<8x8xf32>
    %cst_54 = arith.constant dense<0.000000e+00> : vector<8x8xf32>
    %91 = tpu.matmul %88, %89, %cst_54 {dimension_numbers = #tpu.dot_dimension_numbers<[1], [1], [0], [0], [0, 0, 1, 0], [], []>} : vector<8x8xf32>, vector<8x8xf32>, vector<8x8xf32> -> vector<8x8xf32>
    %92 = arith.addf %91, %21 : vector<8x8xf32>
    %cst_55 = arith.constant dense<0xFF800000> : vector<8xf32>
    %93 = vector.multi_reduction <maximumf>, %92, %cst_55 [1] : vector<8x8xf32> to vector<8xf32>
    %94 = vector.shape_cast %93 : vector<8xf32> to vector<8x1xf32>
    %95 = vector.broadcast %94 : vector<8x1xf32> to vector<8x8xf32>
    %96 = arith.subf %92, %95 : vector<8x8xf32>
    %97 = math.exp %96 : vector<8x8xf32>
    %cst_56 = arith.constant dense<0.000000e+00> : vector<8xf32>
    %98 = vector.multi_reduction <add>, %97, %cst_56 [1] : vector<8x8xf32> to vector<8xf32>
    %99 = vector.shape_cast %98 : vector<8xf32> to vector<8x1xf32>
    %100 = tpu.reciprocal %99 : vector<8x1xf32> -> vector<8x1xf32>
    %101 = vector.broadcast %100 : vector<8x1xf32> to vector<8x8xf32>
    %102 = arith.mulf %97, %101 : vector<8x8xf32>
    %c3 = arith.constant 3 : index
    %c0_57 = arith.constant 0 : index
    %c0_58 = arith.constant 0 : index
    %c0_59 = arith.constant 0 : index
    %103 = vector.load %arg11[%c3, %c0_57, %c0_58, %c0_59] : memref<4x1x8x8xf32, #tpu.memory_space<vmem>>, vector<1x1x8x8xf32>
    %104 = vector.shape_cast %103 : vector<1x1x8x8xf32> to vector<8x8xf32>
    %105 = vector.shape_cast %102 : vector<8x8xf32> to vector<1x1x8x8xf32>
    tpu.vector_store %arg11[%c3, %c0_57, %c0_58, %c0_59], %105 {strides = array<i32>} : memref<4x1x8x8xf32, #tpu.memory_space<vmem>>, vector<1x1x8x8xf32>,
    %cst_60 = arith.constant dense<0.000000e+00> : vector<8x8xf32>
    %106 = tpu.matmul %102, %90, %cst_60 {dimension_numbers = #tpu.dot_dimension_numbers<[1], [0], [0], [1], [0, 0, 1, 1], [], []>} : vector<8x8xf32>, vector<8x8xf32>, vector<8x8xf32> -> vector<8x8xf32>
    %c3_61 = arith.constant 3 : index
    %c0_62 = arith.constant 0 : index
    %c0_63 = arith.constant 0 : index
    %c0_64 = arith.constant 0 : index
    %107 = vector.load %arg10[%c3_61, %c0_62, %c0_63, %c0_64] : memref<4x1x8x8xf32, #tpu.memory_space<vmem>>, vector<1x1x8x8xf32>
    %108 = vector.shape_cast %107 : vector<1x1x8x8xf32> to vector<8x8xf32>
    %109 = vector.shape_cast %106 : vector<8x8xf32> to vector<1x1x8x8xf32>
    tpu.vector_store %arg10[%c3_61, %c0_62, %c0_63, %c0_64], %109 {strides = array<i32>} : memref<4x1x8x8xf32, #tpu.memory_space<vmem>>, vector<1x1x8x8xf32>,
    return
  }
  func.func @transform_0(%arg0: i32, %arg1: i32, %arg2: i32) -> (i32, i32, i32) {
    %c0_i32 = arith.constant 0 : i32
    %c0_i32_0 = arith.constant 0 : i32
    return %arg0, %arg1, %c0_i32 : i32, i32, i32
  }
  func.func @transform_1(%arg0: i32, %arg1: i32, %arg2: i32) -> (i32, i32, i32) {
    %c0_i32 = arith.constant 0 : i32
    %c0_i32_0 = arith.constant 0 : i32
    %c0_i32_1 = arith.constant 0 : i32
    return %arg0, %c0_i32, %c0_i32_0 : i32, i32, i32
  }
  func.func @transform_2(%arg0: i32, %arg1: i32, %arg2: i32) -> (i32, i32, i32) {
    %c0_i32 = arith.constant 0 : i32
    %c0_i32_0 = arith.constant 0 : i32
    %c0_i32_1 = arith.constant 0 : i32
    return %arg0, %c0_i32, %c0_i32_0 : i32, i32, i32
  }
  func.func @transform_3(%arg0: i32, %arg1: i32, %arg2: i32) -> (i32, i32, i32) {
    %c0_i32 = arith.constant 0 : i32
    %c0_i32_0 = arith.constant 0 : i32
    return %arg0, %arg1, %c0_i32 : i32, i32, i32
  }
  func.func @transform_4(%arg0: i32, %arg1: i32, %arg2: i32) -> (i32, i32, i32) {
    %c0_i32 = arith.constant 0 : i32
    %c0_i32_0 = arith.constant 0 : i32
    %c0_i32_1 = arith.constant 0 : i32
    %c0_i32_2 = arith.constant 0 : i32
    return %c0_i32, %c0_i32_0, %c0_i32_1 : i32, i32, i32
  }
  func.func @transform_5(%arg0: i32, %arg1: i32, %arg2: i32) -> (i32, i32, i32) {
    %c0_i32 = arith.constant 0 : i32
    %c0_i32_0 = arith.constant 0 : i32
    %c0_i32_1 = arith.constant 0 : i32
    %c0_i32_2 = arith.constant 0 : i32
    return %c0_i32, %c0_i32_0, %c0_i32_1 : i32, i32, i32
  }
  func.func @transform_6(%arg0: i32, %arg1: i32, %arg2: i32) -> (i32, i32, i32) {
    %c0_i32 = arith.constant 0 : i32
    %c0_i32_0 = arith.constant 0 : i32
    %c0_i32_1 = arith.constant 0 : i32
    %c0_i32_2 = arith.constant 0 : i32
    return %c0_i32, %c0_i32_0, %c0_i32_1 : i32, i32, i32
  }
  func.func @transform_7(%arg0: i32, %arg1: i32, %arg2: i32) -> (i32, i32, i32, i32) {
    %c0_i32 = arith.constant 0 : i32
    %c0_i32_0 = arith.constant 0 : i32
    return %arg2, %arg0, %arg1, %c0_i32 : i32, i32, i32, i32
  }
  func.func @transform_8(%arg0: i32, %arg1: i32, %arg2: i32) -> (i32, i32, i32, i32) {
    %c0_i32 = arith.constant 0 : i32
    %c0_i32_0 = arith.constant 0 : i32
    return %arg2, %arg0, %arg1, %c0_i32 : i32, i32, i32, i32
  }
}

</mosaic_0001>

<bundles_post_ra>
// kernel: tpu_custom_call.1
= control target key start
LH: loop header
LB: loop body
LE: loop exit
PB: predicated region body
PF: predicated region fallthrough
CT: control target
= control target key end

     0   :  { %s2932_s0 = inlined_call_operand.hbm [shape: f32[2,8,32], index: 0, kind: input, shape index: {}]   ;;  %s2933_s1 = inlined_call_operand.hbm [shape: f32[2,8,32], index: 1, kind: input, shape index: {}]   ;;  %s2934_s2 = inlined_call_operand.hbm [shape: f32[2,8,32], index: 2, kind: input, shape index: {}]   ;;  %s2935_s3 = inlined_call_operand.hbm [shape: f32[2,8,8], index: 3, kind: input, shape index: {}]   ;;  %s2936_s4 = inlined_call_operand.hbm [shape: f32[1,32,32], index: 4, kind: input, shape index: {}]   ;;  %s2937_s5 = inlined_call_operand.hbm [shape: f32[1,32,32], index: 5, kind: input, shape index: {}]   ;;  %s2938_s6 = inlined_call_operand.hbm [shape: f32[1,32,32], index: 6, kind: input, shape index: {}]   ;;  %s2939_s7 = inlined_call_operand.hbm [shape: f32[4,2,8,8], index: 7, kind: output, shape index: {0}]   ;;  %s2940_s8 = inlined_call_operand.hbm [shape: f32[4,2,8,8], index: 8, kind: output, shape index: {1}]  }
   0x1   :  { %2960 = sst [smem:[#allocation29_spill]] %s2932_s0 }
   0x2   :  { %2961 = sst [smem:[#allocation30_spill]] %s2933_s1 }
   0x3   :  { %2962 = sst [smem:[#allocation31_spill]] %s2936_s4 }
   0x4   :  { %2963 = sst [smem:[#allocation32_spill]] %s2937_s5 }
   0x5   :  { %2964 = sst [smem:[#allocation33_spill]] %s2939_s7 }
   0x6   :  { %2965 = sst [smem:[#allocation34_spill]] %s2940_s8 }
   0x7   :  { %14 = vsyncpa [#allocation3], 0 }
   0x8   :  { %16 = vsyncpa [#allocation3 + $0x1], 0 }
   0x9   :  { %17 = vsyncpa [#allocation6], 0 }
   0xa   :  { %19 = vsyncpa [#allocation6 + $0x1], 0 }
   0xb   :  { %20 = vsyncpa [#allocation9], 0 }
   0xc   :  { %22 = vsyncpa [#allocation9 + $0x1], 0 }
   0xd   :  { %23 = vsyncpa [#allocation12], 0 }
   0xe   :  { %24 = vsyncpa [#allocation4], 0 }
   0xf   :  { %26 = vsyncpa [#allocation4 + $0x1], 0 }
  0x10   :  { %27 = vsyncpa [#allocation16], 0 }
  0x11   :  { %29 = vsyncpa [#allocation16 + $0x1], 0  ;;  %s2410_s27 = smov 0   ;;  %s2412_s28 = smov 0  }
  0x12   :  { %s2414_s29 = smov 0   ;;  %s2416_s30 = smov 0  }
  0x13   :  { %s2418_s9 = smov 0   ;;  %s2420_s10 = smov 0  }
  0x14 LB: > { %2966 = sst [smem:[#allocation24_spill]] %s2323_s27  ;;  %s2441_s11 = sadd.s32 4294967295, %s2343_s10   ;;  %s2343_s10 = sphi %s2420_s10, %s35_s10   ;;  %s2339_s9 = sphi %s2418_s9, %s3008_s9   ;;  %s2335_s30 = sphi %s2416_s30, %s3007_s30   ;;  %s2331_s29 = sphi %s2414_s29, %s3011_s29   ;;  %s2327_s28 = sphi %s2412_s28, %s3010_s28   ;;  %s2323_s27 = sphi %s2410_s27, %s3009_s27  }
  0x15   : > { %2967 = sst [smem:[#allocation25_spill]] %s2339_s9  ;;  %s1696_s12 = sadd.s32 4294967294, %s2343_s10  }
  0x16   : > { %p76_p0 = scmp.ne.s32.totalorder %s2327_s28, %s2323_s27  ;;  %p2941_p1 = scmp.eq.s32.totalorder %s2441_s11, 0 }
  0x17   : > { %p253_p3 = scmp.eq.s32.totalorder %s1696_s12, 1  ;;  %p1697_p5 = scmp.ge.s32.totalorder %s2343_s10, 1 }
  0x18   : > { %p2450_p4 = por %p2941_p1, %p76_p0  ;;  %p290_p7 = scmp.lt.s32.totalorder %s2343_s10, 3 }
  0x19   : > { %p2455_p6 = por %p253_p3, %p76_p0  ;;  %s2345_s16 = smov [#allocation10]  }
  0x1a   : > { %s2968_s13 = scalar_select %p2450_p4, 1, 0 }
  0x1b   : > { %s2969_s14 = scalar_select %p2455_p6, 1, 0 }
  0x1c   : > { %p2460_p8 = pnand %p1697_p5, %p290_p7  ;;  %s302_s17 = sshll.u32 %s2345_s16, 4  ;;  %s2464_s17 = int_to_ptr.vmem [resolvable:$true] %s302_s17 }
  0x1d   : > { %2970 = sst [smem:[#allocation26_spill]] %s2969_s14  ;;  %s2346_s19 = smov [#allocation11]  }
  0x1e   : > { %s2971_s15 = scalar_select %p2460_p8, 1, 0 }
  0x1f   : > { %p1893_p9 = pneg %p2460_p8  ;;  %s315_s20 = sshll.u32 %s2346_s19, 4  ;;  %s2475_s20 = int_to_ptr.vmem [resolvable:$true] %s315_s20 }
  0x20   : > { %s2973_s4 = sld [smem:[#allocation31_spill]] }
  0x21   : > { %p2471_p11 = pnand %p1893_p9, %p2941_p1 }
  0x23   : > { %s2972_s18 = scalar_select %p2471_p11, 1, 0 }
  0x24   : > { %p2485_p13 = pneg %p2471_p11 }
  0x26   : > { %s2009_s23 = scalar_lea.hbm %s2973_s4, 512 }
  0x27   : > { %p2010_p12 = scmp.ne.s32.totalorder %s2973_s4, %s2009_s23  ;;  %p2016_p5 = scmp.lt.u32.totalorder %s2009_s23, %s2973_s4 }
  0x28   : > { %s2974_s26 = scalar_select %p2485_p13, 1, 0 }
  0x29   : > { %p2012_p0 = pnand %p2485_p13, %p2010_p12 }
  0x2b   : > { %p2013_p3 = pneg %p2012_p0 }
  0x2d   : > { %p2018_p7 = pnand %p2016_p5, %p2013_p3 }
  0x2f   : > { %2021 = shalt.err (!%p2018_p7)
}
  0x30   : > { %s2022_s19 = scalar_lea.vmem %s2464_s17, 512  ;;  %p2030_p2 = scmp.lt.s32.totalorder %s2464_s17, %s2464_s17 }
  0x31   : > { %p2023_p9 = scmp.ne.s32.totalorder %s2464_s17, %s2022_s19  ;;  %p2031_p6 = scmp.lt.s32.totalorder %s2022_s19, %s2022_s19 }
  0x33   : > { %p2025_p10 = pnand %p2023_p9, %p2485_p13  ;;  %p2032_p12 = por %p2031_p6, %p2030_p2 }
  0x35   : > { %p2026_p1 = pneg %p2025_p10 }
  0x37   : > { %p2033_p0 = pnand %p2032_p12, %p2026_p1 }
  0x39   : > { %2036 = shalt.err (!%p2033_p0)
}
  0x3a   : > { %s2945_s21 = smov 128   ;;  %s2946_s22 = smov 8  }
  0x3b   : > { %1896 = dma.hbm_to_vmem [thread:$0]  (!%p2471_p11), %s2973_s4, 512, %s2464_s17, [#allocation9], %s2945_s21, %s2945_s21, %s2946_s22  }
  0x3c   : > { %s2975_s5 = sld [smem:[#allocation32_spill]] }
  0x42   : > { %s2037_s16 = scalar_lea.hbm %s2975_s5, 512 }
  0x43   : > { %p2038_p1 = scmp.ne.s32.totalorder %s2975_s5, %s2037_s16  ;;  %p2044_p10 = scmp.lt.u32.totalorder %s2037_s16, %s2975_s5 }
  0x45   : > { %p2040_p2 = pnand %p2038_p1, %p2485_p13 }
  0x47   : > { %p2041_p6 = pneg %p2040_p2 }
  0x49   : > { %p2046_p3 = pnand %p2044_p10, %p2041_p6 }
  0x4b   : > { %2049 = shalt.err (!%p2046_p3)
}
  0x4c   : > { %s2050_s17 = scalar_lea.vmem %s2475_s20, 512  ;;  %p2058_p12 = scmp.lt.s32.totalorder %s2475_s20, %s2475_s20 }
  0x4d   : > { %p2051_p5 = scmp.ne.s32.totalorder %s2475_s20, %s2050_s17  ;;  %p2059_p0 = scmp.lt.s32.totalorder %s2050_s17, %s2050_s17 }
  0x4f   : > { %p2053_p7 = pnand %p2051_p5, %p2485_p13  ;;  %p2060_p1 = por %p2059_p0, %p2058_p12 }
  0x51   : > { %p2054_p9 = pneg %p2053_p7 }
  0x53   : > { %p2061_p2 = pnand %p2060_p1, %p2054_p9 }
  0x55   : > { %2064 = shalt.err (!%p2061_p2)
}
  0x56   : > { %1899 = dma.hbm_to_vmem [thread:$0]  (!%p2471_p11), %s2975_s5, 512, %s2475_s20, [#allocation12], %s2945_s21, %s2945_s21, %s2946_s22  }
  0x57   : > { %s54_s14 = sadd.s32 1, %s2339_s9  ;;  %s63_s23 = sadd.s32 1, %s2331_s29 }
  0x58   : > { %p56_p6 = scmp.ge.s32.totalorder %s54_s14, 2  ;;  %p70_p10 = scmp.ne.s32.totalorder %s2331_s29, %s2327_s28 }
  0x59   : > { %p71_p3 = scmp.eq.s32.totalorder %s2343_s10, 0  ;;  %p1926_p5 = scmp.lt.s32.totalorder %s2343_s10, 2 }
  0x5a   : > { %s3013_s14 = smov (%p56_p6, %s54_s14), 0  ;;  %p2977_p9 = scmp.eq.s32.totalorder %s2441_s11, 1 }
  0x5b   : > { %2976 = sst [smem:[#allocation27_spill]] %s3013_s14  ;;  %p72_p7 = por %p71_p3, %p70_p10 }
  0x5c   : > { %p2545_p12 = por %p2977_p9, %p70_p10  ;;  %s58_s25 = ssub.s32 %s2339_s9, %s3013_s14 }
  0x5d   : > { %s2947_s20 = sand.u32 1, %s2331_s29   ;;  %p61_p0 = scmp.eq.s32.totalorder %s58_s25, 0 }
  0x5e   : > { %s2978_s24 = scalar_select %p2545_p12, 1, 0 }
  0x5f   : > { %s2554_s12 = sshll.u32 %s2947_s20, 3  ;;  %s2557_s16 = sshll.u32 %s2339_s9, 7 }
  0x60   : > { %p2559_p1 = pnand %p1926_p5, %p72_p7  ;;  %s2952_s7 = sand.u32 1, %s2343_s10  }
  0x61   : > { %s2564_s17 = scalar_select %p61_p0, %s2331_s29, %s63_s23  }
  0x62   : > { %s2979_s19 = scalar_select %p2559_p1, 1, 0 }
  0x63   : > { %2980 = sst [smem:[#allocation28_spill]] %s2564_s17  ;;  %s2981_s1 = sld [smem:[#allocation30_spill]] }
  0x64   : > { %s365_s25 = scalar_lea.vmem [#allocation5], %s2554_s12  ;;  %s2578_s4 = scalar_lea.sflag [#allocation6], %s2952_s7 }
  0x65   : > { %s372_s20 = sshll.u32 %s365_s25, 4  ;;  %p2584_p6 = pneg %p2559_p1  ;;  %s2574_s20 = int_to_ptr.vmem [resolvable:$true] %s372_s20 }
  0x69   : > { %s2571_s22 = scalar_lea.hbm %s2981_s1, %s2557_s16  ;;  %s2070_s25 = scalar_lea.hbm %s2981_s1, 256 }
  0x6a   : > { %s2065_s5 = scalar_lea.hbm %s2571_s22, 128  ;;  %p2071_p5 = scmp.lt.u32.totalorder %s2571_s22, %s2981_s1 }
  0x6b   : > { %p2066_p2 = scmp.ne.s32.totalorder %s2571_s22, %s2065_s5  ;;  %p2072_p7 = scmp.lt.u32.totalorder %s2070_s25, %s2065_s5 }
  0x6c   : > { %p2074_p0 = scmp.lt.u32.totalorder %s2065_s5, %s2571_s22 }
  0x6d   : > { %p2068_p10 = pnand %p2584_p6, %p2066_p2  ;;  %p2073_p9 = por %p2072_p7, %p2071_p5 }
  0x6f   : > { %p2069_p3 = pneg %p2068_p10  ;;  %p2075_p12 = por %p2074_p0, %p2073_p9 }
  0x71   : > { %p2076_p4 = pnand %p2075_p12, %p2069_p3 }
  0x73   : > { %2079 = shalt.err (!%p2076_p4)
}
  0x74   : > { %s2080_s7 = scalar_lea.vmem %s2574_s20, 128  ;;  %s2349_s21 = smov [#allocation5]  }
  0x75   : > { %p2081_p2 = scmp.ne.s32.totalorder %s2574_s20, %s2080_s7  ;;  %s2085_s27 = sshll.u32 %s2349_s21, 4  ;;  %s2086_s27 = int_to_ptr.vmem [resolvable:$false] %s2085_s27 }
  0x76   : > { %s2087_s9 = scalar_lea.vmem %s2086_s27, 256  ;;  %p2088_p11 = scmp.lt.s32.totalorder %s2574_s20, %s2086_s27 }
  0x77   : > { %p2083_p10 = pnand %p2081_p2, %p2584_p6  ;;  %p2089_p13 = scmp.lt.s32.totalorder %s2087_s9, %s2080_s7 }
  0x79   : > { %p2084_p8 = pneg %p2083_p10  ;;  %p2090_p5 = por %p2089_p13, %p2088_p11 }
  0x7b   : > { %p2091_p7 = pnand %p2090_p5, %p2084_p8 }
  0x7d   : > { %2094 = shalt.err (!%p2091_p7)
}
  0x7e   : > { %1909 = dma.hbm_to_vmem [thread:$0]  (!%p2559_p1), %s2571_s22, 128, %s2574_s20, %s2578_s4  }
  0x7f   : > { %s2350_s5 = smov [#allocation13]   ;;  %s2983_s0 = sld [smem:[#allocation29_spill]] }
  0x80   : > { %s328_s14 = sshll.u32 %s2350_s5, 4  ;;  %s2095_s9 = scalar_lea.hbm %s2938_s6, 512  ;;  %s329_s14 = int_to_ptr.vmem [resolvable:$true] %s328_s14 }
  0x81   : > { %p2096_p4 = scmp.ne.s32.totalorder %s2938_s6, %s2095_s9  ;;  %p2984_p8 = scmp.ne.s32.totalorder %s2974_s26, 0 }
  0x82   : > { %p2102_p12 = scmp.lt.u32.totalorder %s2095_s9, %s2938_s6 }
  0x83   : > { %p2098_p11 = pnand %p2096_p4, %p2984_p8 }
  0x85   : > { %s2612_s1 = scalar_lea.hbm %s2983_s0, %s2557_s16  ;;  %p2099_p13 = pneg %p2098_p11 }
  0x87   : > { %p2104_p3 = pnand %p2102_p12, %p2099_p13 }
  0x89   : > { %2107 = shalt.err (!%p2104_p3)
}
  0x8a   : > { %s2108_s5 = scalar_lea.vmem %s329_s14, 512  ;;  %p2116_p10 = scmp.lt.s32.totalorder %s329_s14, %s329_s14 }
  0x8b   : > { %p2109_p9 = scmp.ne.s32.totalorder %s329_s14, %s2108_s5  ;;  %p2117_p5 = scmp.lt.s32.totalorder %s2108_s5, %s2108_s5 }
  0x8d   : > { %p2111_p0 = pnand %p2109_p9, %p2984_p8  ;;  %p2118_p7 = por %p2117_p5, %p2116_p10 }
  0x8f   : > { %p2112_p2 = pneg %p2111_p0 }
  0x91   : > { %p2119_p1 = pnand %p2118_p7, %p2112_p2 }
  0x93   : > { %2122 = shalt.err (!%p2119_p1)
}
  0x94   : > { %p2985_p4 = scmp.ne.s32.totalorder %s2972_s18, 0  ;;  %s2986_s8 = smov 8  }
  0x95   : > { %s2987_s17 = smov 128   ;;  %s346_s26 = scalar_lea.vmem [#allocation2], %s2554_s12 }
  0x96   : > { %1902 = dma.hbm_to_vmem [thread:$0]  (!%p2985_p4), %s2938_s6, 512, %s329_s14, [#allocation12], %s2987_s17, %s2987_s17, %s2986_s8  }
  0x97   : > { %s354_s7 = sshll.u32 %s346_s26, 4  ;;  %s2642_s9 = scalar_lea.hbm %s2934_s2, %s2557_s16  ;;  %s2636_s7 = int_to_ptr.vmem [resolvable:$true] %s354_s7 }
  0x98   : > { %s2988_s22 = sand.u32 1, %s2331_s29   ;;  %s2123_s5 = scalar_lea.hbm %s2612_s1, 128 }
  0x99   : > { %s343_s20 = scalar_lea.sflag [#allocation3], %s2988_s22  ;;  %p2124_p1 = scmp.ne.s32.totalorder %s2612_s1, %s2123_s5 }
  0x9a   : > { %s2128_s14 = scalar_lea.hbm %s2983_s0, 256  ;;  %p2129_p13 = scmp.lt.u32.totalorder %s2612_s1, %s2983_s0 }
  0x9b   : > { %p2126_p8 = pnand %p2124_p1, %p2584_p6  ;;  %p2130_p12 = scmp.lt.u32.totalorder %s2128_s14, %s2123_s5 }
  0x9c   : > { %p2132_p9 = scmp.lt.u32.totalorder %s2123_s5, %s2612_s1 }
  0x9d   : > { %p2127_p11 = pneg %p2126_p8  ;;  %p2131_p3 = por %p2130_p12, %p2129_p13 }
  0x9f   : > { %p2133_p0 = por %p2132_p9, %p2131_p3 }
  0xa1   : > { %p2134_p2 = pnand %p2133_p0, %p2127_p11 }
  0xa3   : > { %2137 = shalt.err (!%p2134_p2)
}
  0xa4   : > { %s2138_s26 = scalar_lea.vmem %s2636_s7, 128  ;;  %s2351_s18 = smov [#allocation2]  }
  0xa5   : > { %p2139_p10 = scmp.ne.s32.totalorder %s2636_s7, %s2138_s26  ;;  %s2143_s27 = sshll.u32 %s2351_s18, 4  ;;  %s2144_s27 = int_to_ptr.vmem [resolvable:$false] %s2143_s27 }
  0xa6   : > { %s2145_s22 = scalar_lea.vmem %s2144_s27, 256  ;;  %p2146_p4 = scmp.lt.s32.totalorder %s2636_s7, %s2144_s27 }
  0xa7   : > { %p2141_p5 = pnand %p2139_p10, %p2584_p6  ;;  %p2147_p1 = scmp.lt.s32.totalorder %s2145_s22, %s2138_s26 }
  0xa9   : > { %p2142_p7 = pneg %p2141_p5  ;;  %p2148_p8 = por %p2147_p1, %p2146_p4 }
  0xab   : > { %p2149_p13 = pnand %p2148_p8, %p2142_p7 }
  0xad   : > { %2152 = shalt.err (!%p2149_p13)
}
  0xae   : > { %p2989_p11 = scmp.ne.s32.totalorder %s2979_s19, 0  ;;  %s383_s5 = scalar_lea.vmem [#allocation7], %s2554_s12 }
  0xaf   : > { %s390_s25 = sshll.u32 %s383_s5, 4  ;;  %s2672_s8 = scalar_lea.hbm %s2935_s3, %s2557_s16  ;;  %s391_s25 = int_to_ptr.vmem [resolvable:$true] %s390_s25 }
  0xb0   : > { %1906 = dma.hbm_to_vmem [thread:$0]  (!%p2989_p11), %s2612_s1, 128, %s2636_s7, %s343_s20  }
  0xb1   : > { %s2153_s17 = scalar_lea.hbm %s2642_s9, 128  ;;  %s2158_s27 = scalar_lea.hbm %s2934_s2, 256 }
  0xb2   : > { %p2154_p12 = scmp.ne.s32.totalorder %s2642_s9, %s2153_s17  ;;  %p2159_p0 = scmp.lt.u32.totalorder %s2642_s9, %s2934_s2 }
  0xb3   : > { %p2160_p2 = scmp.lt.u32.totalorder %s2158_s27, %s2153_s17  ;;  %p2162_p5 = scmp.lt.u32.totalorder %s2153_s17, %s2642_s9 }
  0xb4   : > { %p2156_p3 = pnand %p2154_p12, %p2584_p6 }
  0xb5   : > { %p2161_p10 = por %p2160_p2, %p2159_p0 }
  0xb6   : > { %p2157_p9 = pneg %p2156_p3 }
  0xb7   : > { %p2163_p7 = por %p2162_p5, %p2161_p10 }
  0xb9   : > { %p2164_p4 = pnand %p2163_p7, %p2157_p9 }
  0xbb   : > { %2167 = shalt.err (!%p2164_p4)
}
  0xbc   : > { %s2168_s1 = scalar_lea.vmem %s391_s25, 128  ;;  %s2352_s16 = smov [#allocation7]  }
  0xbd   : > { %p2169_p1 = scmp.ne.s32.totalorder %s391_s25, %s2168_s1  ;;  %s2173_s7 = sshll.u32 %s2352_s16, 4  ;;  %s2174_s7 = int_to_ptr.vmem [resolvable:$false] %s2173_s7 }
  0xbe   : > { %s2175_s20 = scalar_lea.vmem %s2174_s7, 256  ;;  %p2176_p12 = scmp.lt.s32.totalorder %s391_s25, %s2174_s7 }
  0xbf   : > { %p2171_p8 = pnand %p2169_p1, %p2584_p6  ;;  %p2177_p3 = scmp.lt.s32.totalorder %s2175_s20, %s2168_s1 }
  0xc1   : > { %p2172_p13 = pneg %p2171_p8  ;;  %p2178_p11 = por %p2177_p3, %p2176_p12 }
  0xc3   : > { %p2179_p0 = pnand %p2178_p11, %p2172_p13 }
  0xc5   : > { %2182 = shalt.err (!%p2179_p0)
}
  0xc6   : > { %p2990_p2 = scmp.ne.s32.totalorder %s2979_s19, 0  ;;  %s401_s0 = scalar_lea.vmem [#allocation8], %s2554_s12 }
  0xc7   : > { %s409_s5 = sshll.u32 %s401_s0, 4  ;;  %s2991_s21 = sand.u32 1, %s2343_s10   ;;  %s410_s5 = int_to_ptr.vmem [resolvable:$true] %s409_s5 }
  0xc8   : > { %1912 = dma.hbm_to_vmem [thread:$0]  (!%p2990_p2), %s2642_s9, 128, %s391_s25, %s2578_s4  }
  0xc9   : > { %s398_s14 = scalar_lea.sflag [#allocation9], %s2991_s21  ;;  %s2183_s17 = scalar_lea.hbm %s2672_s8, 128 }
  0xca   : > { %p2184_p11 = scmp.ne.s32.totalorder %s2672_s8, %s2183_s17  ;;  %s2188_s27 = scalar_lea.hbm %s2935_s3, 256 }
  0xcb   : > { %p2189_p5 = scmp.lt.u32.totalorder %s2672_s8, %s2935_s3  ;;  %p2190_p7 = scmp.lt.u32.totalorder %s2188_s27, %s2183_s17 }
  0xcc   : > { %p2186_p9 = pnand %p2184_p11, %p2584_p6  ;;  %p2192_p1 = scmp.lt.u32.totalorder %s2183_s17, %s2672_s8 }
  0xcd   : > { %p2191_p4 = por %p2190_p7, %p2189_p5 }
  0xce   : > { %p2187_p10 = pneg %p2186_p9 }
  0xcf   : > { %p2193_p8 = por %p2192_p1, %p2191_p4 }
  0xd1   : > { %p2194_p13 = pnand %p2193_p8, %p2187_p10 }
  0xd3   : > { %2197 = shalt.err (!%p2194_p13)
}
  0xd4   : > { %s2198_s4 = scalar_lea.vmem %s410_s5, 128  ;;  %s2353_s12 = smov [#allocation8]  }
  0xd5   : > { %p2199_p12 = scmp.ne.s32.totalorder %s410_s5, %s2198_s4  ;;  %s2203_s9 = sshll.u32 %s2353_s12, 4  ;;  %s2204_s9 = int_to_ptr.vmem [resolvable:$false] %s2203_s9 }
  0xd6   : > { %s2205_s25 = scalar_lea.vmem %s2204_s9, 256  ;;  %p2206_p11 = scmp.lt.s32.totalorder %s410_s5, %s2204_s9 }
  0xd7   : > { %p2201_p3 = pnand %p2199_p12, %p2584_p6  ;;  %p2207_p9 = scmp.lt.s32.totalorder %s2205_s25, %s2198_s4 }
  0xd9   : > { %p2202_p0 = pneg %p2201_p3  ;;  %p2208_p2 = por %p2207_p9, %p2206_p11 }
  0xdb   : > { %p2209_p5 = pnand %p2208_p2, %p2202_p0 }
  0xdd   : > { %2212 = shalt.err (!%p2209_p5)
}
  0xde   : > { %p2992_p7 = scmp.ne.s32.totalorder %s2979_s19, 0  ;;  %p2993_p10 = scmp.ne.s32.totalorder %s2971_s15, 0 }
  0xdf   : > { %s2715_s23 = sand.u32 (!%p2993_p10), 1, %s2327_s28   ;;  %p2994_p6 = scmp.ne.s32.totalorder (!%p2993_p10), %s2968_s13, 0 }
  0xe0   : > { %1915 = dma.hbm_to_vmem [thread:$0]  (!%p2992_p7), %s2672_s8, 128, %s410_s5, %s398_s14  }
  0xe1   : > { %418 = sbr.rel (%p2993_p10) target bundleno = 1349 (0x545), region = 48  ;;  %s2718_s16 = sshll.u32 (!%p2993_p10), %s2715_s23, 3 }
  0xe2   : > { %s421_s7 = scalar_lea.sflag (!%p2993_p10), [#allocation3], %s2715_s23  ;;  %s424_s20 = scalar_lea.vmem (!%p2993_p10), [#allocation2], %s2718_s16 }
  0xe8   : > { %2294 = dma.done.wait (%p2994_p6), %s421_s7, 128  }
  0xe9   : > { %2296 = vsyncadd (%p2994_p6), %s421_s7, 4294967168  ;;  %s429_s15 = sand.u32 1, %s2441_s11   ;;  %s433_s8 = scalar_lea.vmem [#allocation5], %s2718_s16 }
  0xea   : > { %s430_s19 = scalar_lea.sflag [#allocation6], %s429_s15 }
  0xeb   : > { %2298 = dma.done.wait (%p2994_p6), %s430_s19, 256  }
  0xec   : > { %2300 = vsyncadd (%p2994_p6), %s430_s19, 4294967040  ;;  %s442_s0 = scalar_lea.vmem [#allocation7], %s2718_s16  ;;  %s448_s5 = scalar_lea.sflag [#allocation9], %s429_s15 }
  0xed   : > { %s451_s21 = scalar_lea.vmem [#allocation8], %s2718_s16 }
  0xee   : > { %2302 = dma.done.wait (%p2994_p6), %s448_s5, 128  }
  0xef   : > { %2304 = vsyncadd (%p2994_p6), %s448_s5, 4294967168  ;;  %p2995_p2 = scmp.eq.s32.totalorder %s2441_s11, 0 }
  0xf1   : > { %2306 = dma.done.wait (%p2995_p2), [#allocation9], 512   ;;  %p2996_p4 = pmov %p2995_p2 }
  0xf2   : > { %p2997_p1 = pmov %p2995_p2 }
  0xf3   : > { %2308 = vsyncadd (%p2996_p4), [#allocation9], 4294966784 }
  0xf4   : > { %2310 = dma.done.wait (%p2997_p1), [#allocation12], 1024   ;;  %p2998_p8 = pmov %p2997_p1 }
  0xf5   : > { %v2354_v0 = vmov 0.0|0.0   ;;  %vm2355_vm0 = vmmov 0   ;;  %v2356_v1 = vmov 0.0   ;;  %v528_v2 = vld [vmem:[#allocation11] sm:$0xff]  ;;  %v529_v3 = vld [vmem:[#allocation11 + $0x8] sm:$0xff]  ;;  %v530_v7 = vld [vmem:[#allocation11 + $0x10] sm:$0xff] }
  0xf6   : > { %2312 = vsyncadd (%p2998_p8), [#allocation12], 4294966272  ;;  %1857 = vmatprep.subr.bf16.mxu1 %v2354_v0  ;;  %1851 = vmatprep.subr.bf16.mxu0 %v2354_v0  ;;  %v523_v4 = vld [vmem:[#allocation10] sm:$0xff]  ;;  %v1858_v5 = vpack.c.bf16 %v529_v3, %v528_v2  ;;  %v524_v6 = vld [vmem:[#allocation10 + $0x8] sm:$0xff]  ;;  %vm537_vm1 = vcmask 261120   ;;  %vm759_vm2 = vcmask 64512  }
  0xf7   : > { %1797 = vmatprep.mubr.msk.f32.mxu1 %vm2355_vm0, %v2356_v1  ;;  %1786 = vmatprep.mubr.msk.f32.mxu0 %vm2355_vm0, %v2356_v1  ;;  %v531_v8 = vld [vmem:[#allocation11 + $0x18] sm:$0xff]  ;;  %v1852_v9 = vpack.c.bf16 %v524_v6, %v523_v4  ;;  %v525_v10 = vld [vmem:[#allocation10 + $0x10] sm:$0xff]  ;;  %v518_v15 = vld [vmem:[%s424_s20] sm:$0xff]  ;;  %s2357_s11 = smov 112   ;;  %s2358_s13 = smov 120  }
  0xf8   : > { %v526_v11 = vld [vmem:[#allocation10 + $0x18] sm:$0xff]  ;;  %1859 = vmatpush3.bf16.msra.mxu1 %v1858_v5  ;;  %v1861_v12 = vpack.c.bf16 %v531_v8, %v530_v7  ;;  %v533_v16 = vld [vmem:[#allocation13] sm:$0xff]  ;;  %v534_v17 = vld [vmem:[#allocation13 + $0x8] sm:$0xff]  ;;  %s2359_s14 = smov 104   ;;  %s1718_s17 = sshll.u32 %s2715_s23, 5 }
  0xf9   : > { %1853 = vmatpush3.bf16.msra.mxu0 %v1852_v9  ;;  %1860 = vmatprep.subr.bf16.mxu1 %v2354_v0  ;;  %v1855_v13 = vpack.c.bf16 %v526_v11, %v525_v10  ;;  %v519_v14 = vld [vmem:[%s433_s8] sm:$0xff]  ;;  %v1864_v19 = vpack.c.bf16 %v534_v17, %v533_v16  ;;  %v520_v22 = vld [vmem:[%s442_s0] sm:$0xff]  ;;  %s2808_s26 = scalar_lea.vmem [#allocation15], %s1718_s17  ;;  %s1743_s27 = sshll.u32 %s2335_s30, 7 }
  0xfa   : > { %1854 = vmatprep.subr.bf16.mxu0 %v2354_v0  ;;  %v535_v18 = vld [vmem:[#allocation13 + $0x10] sm:$0xff]  ;;  %v536_v20 = vld [vmem:[#allocation13 + $0x18] sm:$0xff]  ;;  %s1471_s18 = sshll.u32 %s2808_s26, 4  ;;  %s2999_s4 = sld [smem:[#allocation34_spill]]  ;;  %s2831_s18 = int_to_ptr.vmem [resolvable:$true] %s1471_s18 }
  0xfb   : > { %v1867_v21 = vpack.c.bf16 %v536_v20, %v535_v18  ;;  %v758_v36 = vld [vmem:[%s451_s21] sm:$0xff]  ;;  %s1436_s9 = scalar_lea.sflag [#allocation16], %s2715_s23  ;;  %s2213_s25 = scalar_lea.vmem %s2831_s18, 512 }
  0xfc   : > { %1862 = vmatpush3.bf16.msra.mxu1 %v1861_v12  ;;  %p2214_p13 = scmp.ne.s32.totalorder %s2831_s18, %s2213_s25  ;;  %p3000_p12 = scmp.ne.s32.totalorder %s2978_s24, 0 }
  0xfd   : > { %1856 = vmatpush3.bf16.msra.mxu0 %v1855_v13  ;;  %1811 = vmatprep.subr.mxu1 %v2356_v1  ;;  %s2360_s16 = smov [#allocation15]  }
  0xfe   : > { %1863 = vmatprep.subr.bf16.mxu0 %v2354_v0  ;;  %p2215_p3 = pnand %p2214_p13, %p3000_p12  ;;  %s2217_s7 = sshll.u32 %s2360_s16, 4  ;;  %s2218_s7 = int_to_ptr.vmem [resolvable:$false] %s2217_s7 }
  0xff   : > { %1798 = vmatmul.mubr.msk.f32.vlgmr.msra.gmra.mrb[0].mxu1 %vm537_vm1, %v519_v14  ;;  %s2219_s20 = scalar_lea.vmem %s2218_s7, 1024  ;;  %p2220_p11 = scmp.lt.s32.totalorder %s2831_s18, %s2218_s7 }
 0x100   : > { %1787 = vmatmul.mubr.msk.f32.vlgmr.msra.gmra.mrb[0].mxu0 %vm537_vm1, %v518_v15  ;;  %1813 = vmatprep.mubr.msk.f32.mxu1 %vm2355_vm0, %v2356_v1  ;;  %s2838_s12 = scalar_lea.hbm %s2999_s4, %s1743_s27  ;;  %p2216_p0 = pneg %p2215_p3 }
 0x101   : > { %1808 = vmatprep.mubr.msk.f32.mxu0 %vm2355_vm0, %v2356_v1  ;;  %1865 = vmatpush3.bf16.msra.mxu0 %v1864_v19  ;;  %p2221_p9 = scmp.lt.s32.totalorder %s2219_s20, %s2213_s25 }
 0x102   : > { %1866 = vmatprep.subr.bf16.mxu0 %v2354_v0 }
 0x103   : > { %p2222_p5 = por %p2221_p9, %p2220_p11 }
 0x105   : > { %1868 = vmatpush3.bf16.msra.mxu0 %v1867_v21  ;;  %p2223_p7 = pnand %p2222_p5, %p2216_p0 }
 0x106   : > { %1821 = vmatprep.subr.mxu0 %v2356_v1 }
 0x108   : > { %1809 = vmatmul.mubr.msk.f32.vlgmr.msra.gmra.mrb[2].mxu0 %vm537_vm1, %v520_v22 }
 0x109   : > { %1823 = vmatprep.mubr.msk.f32.mxu0 %vm2355_vm0, %v2356_v1 }
 0x1d2   : > { %v681_v23 = vpop.f32.mrb[0].mxu1 }
 0x1d3   : > { %1094 = vrot.lane.b32.xlu1 %v681_v23, %s2357_s11  ;;  %924 = vrot.lane.b32.xlu0 %v681_v23, %s2358_s13  ;;  %v607_v24 = vpop.f32.mrb[0].mxu0  ;;  %v1799_v25 = vpop.f32.mrb[1].mxu1 }
 0x1d4   : > { %v611_v26 = vmul.f32 0.35355338, %v607_v24  ;;  %1812 = vmatpush3.xpose.msk.msra.mxu1 %vm759_vm2, %v681_v23  ;;  %v1788_v27 = vpop.f32.mrb[1].mxu0 }
 0x1d5   : > { %1816 = vmatprep.subr.mxu1 %v2356_v1 }
 0x1d7   : > { %1814 = vmatmul.mubr.msk.f32.vlgmr.msra.gmra.mrb[2].mxu1 %vm759_vm2, %v611_v26  ;;  %1092 = vrot.lane.b32.xlu1 %v611_v26, %s2357_s11 }
 0x1d8   : > { %922 = vrot.lane.b32.xlu0 %v611_v26, %s2358_s13  ;;  %1818 = vmatprep.mubr.msk.f32.mxu1 %vm2355_vm0, %v2356_v1 }
 0x1db   : > { %1261 = vrot.lane.b32.xlu1 %v611_v26, %s2359_s14  ;;  %v754_v34 = vpop.f32.mrb[2].mxu0 }
 0x1dc   : > { %1263 = vrot.lane.b32.xlu0 %v681_v23, %s2359_s14  ;;  %v1810_v35 = vpop.f32.mrb[3].mxu0  ;;  %1817 = vmatpush3.msra.mxu1 %v754_v34 }
 0x1dd   : > { %1826 = vmatprep.subr.mxu1 %v2356_v1 }
 0x245   : > { %v925_v28 = vpop.permute.xlu0 %924  ;;  %v1095_v29 = vpop.permute.xlu1 %1094 }
 0x246   : > { %1822 = vmatpush3.xpose.msk.msra.mxu0 %vm759_vm2, %v925_v28 }
 0x247   : > { %1831 = vmatprep.subr.mxu0 %v2356_v1 }
 0x249   : > { %v1093_v31 = vpop.permute.xlu1 %1092 }
 0x24a   : > { %v923_v30 = vpop.permute.xlu0 %922 }
 0x24b   : > { %1824 = vmatmul.mubr.msk.f32.vlgmr.msra.gmra.mrb[4].mxu0 %vm759_vm2, %v923_v30 }
 0x24c   : > { %1832 = vmatpush3.xpose.msk.msra.mxu0 %vm759_vm2, %v1095_v29  ;;  %1833 = vmatprep.mubr.msk.f32.mxu0 %vm2355_vm0, %v2356_v1 }
 0x24d   : > { %1841 = vmatprep.subr.mxu0 %v2356_v1  ;;  %v1262_v33 = vpop.permute.xlu1 %1261 }
 0x24e   : > { %v1264_v32 = vpop.permute.xlu0 %1263 }
 0x24f   : > { %1834 = vmatmul.mubr.msk.f32.vlgmr.msra.gmra.mrb[6].mxu0 %vm759_vm2, %v1093_v31 }
 0x250   : > { %1842 = vmatpush3.xpose.msk.msra.mxu0 %vm759_vm2, %v1264_v32  ;;  %1843 = vmatprep.mubr.msk.f32.mxu0 %vm2355_vm0, %v2356_v1 }
 0x253   : > { %1844 = vmatmul.mubr.msk.f32.vlgmr.msra.gmra.mrb[8].mxu0 %vm759_vm2, %v1262_v33 }
 0x2aa   : > { %v832_v37 = vpop.f32.mrb[2].mxu1 }
 0x2ab   : > { %v833_v38 = vadd.f32 %v832_v37, %v758_v36  ;;  %v1815_v39 = vpop.f32.mrb[3].mxu1 }
 0x2ad   : > { %v836_v40 = vsel %vm759_vm2, %v833_v38, -inf }
 0x2ae   : > { %837 = vmax.xlane.f32.xlu0 %v836_v40 }
 0x31e   : > { %v996_v41 = vpop.f32.mrb[4].mxu0 }
 0x31f   : > { %v997_v42 = vadd.f32 %v996_v41, %v758_v36  ;;  %v1825_v43 = vpop.f32.mrb[5].mxu0 }
 0x321   : > { %v1000_v44 = vsel %vm759_vm2, %v997_v42, -inf }
 0x322   : > { %1001 = vmax.xlane.f32.xlu1 %v1000_v44  ;;  %v1166_v45 = vpop.f32.mrb[6].mxu0 }
 0x323   : > { %v1167_v46 = vadd.f32 %v1166_v45, %v758_v36  ;;  %v1835_v47 = vpop.f32.mrb[7].mxu0 }
 0x325   : > { %v1170_v48 = vsel %vm759_vm2, %v1167_v46, -inf }
 0x326   : > { %1171 = vmax.xlane.f32.xlu0 %v1170_v48  ;;  %v1335_v49 = vpop.f32.mrb[8].mxu0 }
 0x327   : > { %v1336_v50 = vadd.f32 %v1335_v49, %v758_v36  ;;  %v1845_v51 = vpop.f32.mrb[9].mxu0 }
 0x329   : > { %v1339_v52 = vsel %vm759_vm2, %v1336_v50, -inf }
 0x32a   : > { %1340 = vmax.xlane.f32.xlu0 %v1339_v52 }
 0x333   : > { %1014 = vrot.lane.b32.xlu1 %v754_v34, %s2358_s13 }
 0x33b   : > { %v838_v53 = vpop.xlane.xlu0 %837 }
 0x33c   : > { %v839_v54 = vsub.f32 %v833_v38, %v838_v53 }
 0x33e   : > { %v840_v55 = vmul.f32 1.442695, %v839_v54 }
 0x340   : > { %1993 = vpow2.f32 %v840_v55 }
 0x34a   : > { %v1994_v56 = vpop.eup %1993 }
 0x34b   : > { %v842_v57 = vsel %vm759_vm2, %v1994_v56, 0.0 }
 0x357   : > { %843 = vadd.xlane.f32.xlu1 %v842_v57 }
 0x3af   : > { %v1002_v58 = vpop.xlane.xlu1 %1001 }
 0x3b0   : > { %v1003_v59 = vsub.f32 %v997_v42, %v1002_v58 }
 0x3b2   : > { %v1004_v60 = vmul.f32 1.442695, %v1003_v59 }
 0x3b3   : > { %v1172_v61 = vpop.xlane.xlu0 %1171  ;;  %v1015_v10 = vpop.permute.xlu1 %1014 }
 0x3b4   : > { %1995 = vpow2.f32 %v1004_v60  ;;  %v1173_v62 = vsub.f32 %v1167_v46, %v1172_v61 }
 0x3b6   : > { %v1174_v63 = vmul.f32 1.442695, %v1173_v62 }
 0x3b7   : > { %v1341_v0 = vpop.xlane.xlu0 %1340 }
 0x3b8   : > { %1997 = vpow2.f32 %v1174_v63  ;;  %v1342_v2 = vsub.f32 %v1336_v50, %v1341_v0 }
 0x3ba   : > { %v1343_v3 = vmul.f32 1.442695, %v1342_v2 }
 0x3bc   : > { %1999 = vpow2.f32 %v1343_v3 }
 0x3be   : > { %v1996_v4 = vpop.eup %1995 }
 0x3bf   : > { %v1006_v5 = vsel %vm759_vm2, %v1996_v4, 0.0 }
 0x3c0   : > { %1007 = vadd.xlane.f32.xlu0 %v1006_v5 }
 0x3c2   : > { %v1998_v6 = vpop.eup %1997 }
 0x3c3   : > { %v1176_v7 = vsel %vm759_vm2, %v1998_v6, 0.0 }
 0x3c4   : > { %1177 = vadd.xlane.f32.xlu1 %v1176_v7 }
 0x3c6   : > { %v2000_v8 = vpop.eup %1999 }
 0x3c7   : > { %v1345_v9 = vsel %vm759_vm2, %v2000_v8, 0.0 }
 0x3c8   : > { %1346 = vadd.xlane.f32.xlu0 %v1345_v9 }
 0x3d5   : > { %1352 = vrot.lane.b32.xlu1 %v754_v34, %s2359_s14 }
 0x3de   : > { %1183 = vrot.lane.b32.xlu0 %v754_v34, %s2357_s11 }
 0x3e4   : > { %v844_v11 = vpop.xlane.xlu1 %843 }
 0x3e5   : > { %2001 = vrcp.f32 %v844_v11 }
 0x3ef   : > { %v2002_v12 = vpop.eup %2001 }
 0x3f0   : > { %v846_v13 = vmul.f32 %v2002_v12, %v1994_v56 }
 0x3f2   : > { %1819 = vmatmul.mubr.msk.f32.vlgmr.msra.gmra.mrb[4].mxu1 %vm759_vm2, %v846_v13  ;;  %847 = vst.msk [vmem:[%s2808_s26] sm:$0xff] %vm759_vm2, %v846_v13 }
 0x3f3   : > { %1827 = vmatpush3.msra.mxu1 %v1015_v10  ;;  %1828 = vmatprep.mubr.msk.f32.mxu1 %vm2355_vm0, %v2356_v1 }
 0x3f4   : > { %1836 = vmatprep.subr.mxu1 %v2356_v1 }
 0x44d   : > { %v1008_v14 = vpop.xlane.xlu0 %1007 }
 0x44e   : > { %2003 = vrcp.f32 %v1008_v14 }
 0x451   : > { %v1178_v15 = vpop.xlane.xlu1 %1177 }
 0x452   : > { %2005 = vrcp.f32 %v1178_v15 }
 0x455   : > { %v1347_v16 = vpop.xlane.xlu0 %1346  ;;  %v1353_v22 = vpop.permute.xlu1 %1352 }
 0x456   : > { %2007 = vrcp.f32 %v1347_v16 }
 0x458   : > { %v2004_v17 = vpop.eup %2003 }
 0x459   : > { %v1010_v18 = vmul.f32 %v2004_v17, %v1996_v4  ;;  %v1184_v19 = vpop.permute.xlu0 %1183 }
 0x45b   : > { %1829 = vmatmul.mubr.msk.f32.vlgmr.msra.gmra.mrb[6].mxu1 %vm759_vm2, %v1010_v18  ;;  %1728 = vst.msk [vmem:[%s2808_s26 + $0x8] sm:$0xff] %vm759_vm2, %v1010_v18 }
 0x45c   : > { %v2006_v20 = vpop.eup %2005  ;;  %1837 = vmatpush3.msra.mxu1 %v1184_v19  ;;  %1838 = vmatprep.mubr.msk.f32.mxu1 %vm2355_vm0, %v2356_v1 }
 0x45d   : > { %v1180_v21 = vmul.f32 %v2006_v20, %v1998_v6  ;;  %1846 = vmatprep.subr.mxu1 %v2356_v1 }
 0x45f   : > { %1839 = vmatmul.mubr.msk.f32.vlgmr.msra.gmra.mrb[8].mxu1 %vm759_vm2, %v1180_v21  ;;  %1733 = vst.msk [vmem:[%s2808_s26 + $0x10] sm:$0xff] %vm759_vm2, %v1180_v21 }
 0x460   : > { %v2008_v23 = vpop.eup %2007  ;;  %1847 = vmatpush3.msra.mxu1 %v1353_v22  ;;  %1848 = vmatprep.mubr.msk.f32.mxu1 %vm2355_vm0, %v2356_v1 }
 0x461   : > { %v1349_v24 = vmul.f32 %v2008_v23, %v2000_v8 }
 0x463   : > { %1849 = vmatmul.mubr.msk.f32.vlgmr.msra.gmra.mrb[10].mxu1 %vm759_vm2, %v1349_v24  ;;  %1738 = vst.msk [vmem:[%s2808_s26 + $0x18] sm:$0xff] %vm759_vm2, %v1349_v24 }
 0x464   : > { %2226 = shalt.err (!%p2223_p7)
}
 0x465   : > { %s2227_s15 = scalar_lea.hbm %s2838_s12, 512  ;;  %s2231_s0 = scalar_lea.hbm %s2999_s4, 1024 }
 0x466   : > { %p2228_p10 = scmp.ne.s32.totalorder %s2838_s12, %s2227_s15  ;;  %p2232_p4 = scmp.lt.u32.totalorder %s2838_s12, %s2999_s4 }
 0x467   : > { %p2233_p1 = scmp.lt.u32.totalorder %s2231_s0, %s2227_s15  ;;  %p2235_p13 = scmp.lt.u32.totalorder %s2227_s15, %s2838_s12 }
 0x468   : > { %p2229_p6 = pnand %p2228_p10, %p3000_p12 }
 0x469   : > { %p2234_p8 = por %p2233_p1, %p2232_p4 }
 0x46a   : > { %p2230_p2 = pneg %p2229_p6 }
 0x46b   : > { %p2236_p3 = por %p2235_p13, %p2234_p8 }
 0x46d   : > { %p2237_p0 = pnand %p2236_p3, %p2230_p2 }
 0x46f   : > { %2240 = shalt.err (!%p2237_p0)
}
 0x470   : > { %s2361_s11 = smov 128   ;;  %s2362_s13 = smov 256  }
 0x471   : > { %s2363_s14 = smov 8   ;;  %s508_s26 = scalar_lea.vmem [#allocation14], %s1718_s17 }
 0x472   : > { %1890 = dma.vmem_to_hbm [thread:$0]  (%p3000_p12), %s2831_s18, 512, %s2838_s12, %s1436_s9, %s2361_s11, %s2362_s13, %s2363_s14  }
 0x473   : > { %s1452_s22 = sshll.u32 %s508_s26, 4  ;;  %s3001_s12 = sld [smem:[#allocation33_spill]]  ;;  %s2872_s22 = int_to_ptr.vmem [resolvable:$true] %s1452_s22 }
 0x474   : > { %s1431_s9 = scalar_lea.sflag [#allocation4], %s2715_s23  ;;  %s2241_s25 = scalar_lea.vmem %s2872_s22, 512 }
 0x475   : > { %p2242_p11 = scmp.ne.s32.totalorder %s2872_s22, %s2241_s25  ;;  %s2364_s16 = smov [#allocation14]  }
 0x476   : > { %s2245_s30 = sshll.u32 %s2364_s16, 4  ;;  %s2246_s30 = int_to_ptr.vmem [resolvable:$false] %s2245_s30 }
 0x477   : > { %p2243_p9 = pnand %p2242_p11, %p3000_p12  ;;  %s2247_s7 = scalar_lea.vmem %s2246_s30, 1024 }
 0x478   : > { %p2248_p7 = scmp.lt.s32.totalorder %s2872_s22, %s2246_s30  ;;  %p2249_p10 = scmp.lt.s32.totalorder %s2247_s7, %s2241_s25 }
 0x479   : > { %s2879_s17 = scalar_lea.hbm %s3001_s12, %s1743_s27  ;;  %p2244_p5 = pneg %p2243_p9 }
 0x47a   : > { %p2250_p6 = por %p2249_p10, %p2248_p7 }
 0x47c   : > { %p2251_p2 = pnand %p2250_p6, %p2244_p5 }
 0x4c5   : > { %v917_v1 = vpop.f32.mrb[4].mxu1 }
 0x4c6   : > { %921 = vst.msk [vmem:[%s508_s26] sm:$0xff] %vm759_vm2, %v917_v1  ;;  %v1820_v25 = vpop.f32.mrb[5].mxu1 }
 0x52e   : > { %v1086_v26 = vpop.f32.mrb[6].mxu1 }
 0x52f   : > { %1730 = vst.msk [vmem:[%s508_s26 + $0x8] sm:$0xff] %vm759_vm2, %v1086_v26  ;;  %v1830_v27 = vpop.f32.mrb[7].mxu1 }
 0x532   : > { %v1255_v28 = vpop.f32.mrb[8].mxu1 }
 0x533   : > { %1735 = vst.msk [vmem:[%s508_s26 + $0x10] sm:$0xff] %vm759_vm2, %v1255_v28  ;;  %v1840_v29 = vpop.f32.mrb[9].mxu1 }
 0x536   : > { %v1424_v30 = vpop.f32.mrb[10].mxu1 }
 0x537   : > { %1740 = vst.msk [vmem:[%s508_s26 + $0x18] sm:$0xff] %vm759_vm2, %v1424_v30  ;;  %v1850_v31 = vpop.f32.mrb[11].mxu1 }
 0x538   : > { %2254 = shalt.err (!%p2251_p2)
}
 0x539   : > { %s2255_s27 = scalar_lea.hbm %s2879_s17, 512  ;;  %s2259_s19 = scalar_lea.hbm %s3001_s12, 1024 }
 0x53a   : > { %p2256_p4 = scmp.ne.s32.totalorder %s2879_s17, %s2255_s27  ;;  %p2260_p13 = scmp.lt.u32.totalorder %s2879_s17, %s3001_s12 }
 0x53b   : > { %p2261_p3 = scmp.lt.u32.totalorder %s2259_s19, %s2255_s27  ;;  %p2263_p11 = scmp.lt.u32.totalorder %s2255_s27, %s2879_s17 }
 0x53c   : > { %p2257_p1 = pnand %p2256_p4, %p3000_p12 }
 0x53d   : > { %p2262_p0 = por %p2261_p3, %p2260_p13 }
 0x53e   : > { %p2258_p8 = pneg %p2257_p1 }
 0x53f   : > { %p2264_p9 = por %p2263_p11, %p2262_p0 }
 0x541   : > { %p2265_p5 = pnand %p2264_p9, %p2258_p8 }
 0x543   : > { %2268 = shalt.err (!%p2265_p5)
}
 0x544   : > { %1889 = dma.vmem_to_hbm [thread:$0]  (%p3000_p12), %s2872_s22, 512, %s2879_s17, %s1431_s9, %s2361_s11, %s2362_s13, %s2363_s14  }
 0x545 PF: > { %s3002_s5 = sld [smem:[#allocation24_spill]]  ;;  %s3003_s21 = sld [smem:[#allocation26_spill]] }
 0x546   : > { %p3005_p10 = scmp.ge.s32.totalorder %s2343_s10, 2 }
 0x54b   : > { %s1486_s26 = sand.u32 1, %s3002_s5   ;;  %p3004_p7 = scmp.ne.s32.totalorder %s3003_s21, 0 }
 0x54c   : > { %s1487_s18 = scalar_lea.sflag [#allocation4], %s1486_s26 }
 0x54d   : > { %p1917_p6 = pnand %p3005_p10, %p3004_p7 }
 0x54f   : > { %2314 = dma.done.wait (!%p1917_p6), %s1487_s18, 512  }
 0x550   : > { %2316 = vsyncadd (!%p1917_p6), %s1487_s18, 4294966784  ;;  %s1496_s24 = scalar_lea.sflag [#allocation16], %s1486_s26 }
 0x551   : > { %2318 = dma.done.wait (!%p1917_p6), %s1496_s24, 512  }
 0x552   : > { %2320 = vsyncadd (!%p1917_p6), %s1496_s24, 4294966784  ;;  %s35_s10 = sadd.s32 1, %s2343_s10   ;;  %s3006_s23 = sld [smem:[#allocation28_spill]] }
 0x553   : > { %p32_p2 = scmp.ge.s32.totalorder %s35_s10, 4   ;;  %s3007_s30 = sld [smem:[#allocation25_spill]] }
 0x554   : > { %s3008_s9 = sld [smem:[#allocation27_spill]]  ;;  %s3009_s27 = smov %s2327_s28 }
 0x555   : > { %s3010_s28 = smov %s2331_s29  ;;  %34 = sbr.rel (!%p32_p2) target bundleno = 20 (0x14), region = 168 }
 0x558   : > { %s3011_s29 = smov %s3006_s23 }
 0x55c   :  { %1501 = vsyncpa [#allocation3], 1 }
 0x55d   :  { %1503 = vsyncpa [#allocation3 + $0x1], 1 }
 0x55e   :  { %1504 = vsyncpa [#allocation6], 1 }
 0x55f   :  { %1506 = vsyncpa [#allocation6 + $0x1], 1 }
 0x560   :  { %1507 = vsyncpa [#allocation9], 1 }
 0x561   :  { %1509 = vsyncpa [#allocation9 + $0x1], 1 }
 0x562   :  { %1510 = vsyncpa [#allocation12], 1 }
 0x563   :  { %1511 = vsyncpa [#allocation4], 1 }
 0x564   :  { %1513 = vsyncpa [#allocation4 + $0x1], 1 }
 0x565   :  { %1514 = vsyncpa [#allocation16], 1 }
 0x566   :  { %1516 = vsyncpa [#allocation16 + $0x1], 1 }

</bundles_post_ra>
